<compile_context>
chip_gen: v7x
topology: tpu7x:2x2x1
jax: 0.10.0
libtpu: 0.0.40
codegen_flags: <defaults>
</compile_context>

<pallas_src>
import jax
import jax.numpy as jnp
from jax.experimental import pallas as pl
from jax.experimental.pallas import tpu as pltpu

EPS = 1e-5  # PyTorch BatchNorm1d default eps


# ---------------------------------------------------------------------------
# Chip detection (pack factor / TensorCore count heuristics)
# ---------------------------------------------------------------------------
def _device_kind():
    try:
        return jax.devices()[0].device_kind.lower()
    except Exception:
        return ""


def _default_pack():
    kind = _device_kind()
    # 128-wide MXU generations -> pack K to 128; 256-wide (v6e/v7x) -> 256.
    if any(v in kind for v in ("v2", "v3", "v4", "v5")):
        return 8
    return 16


def _num_tensorcores():
    kind = _device_kind()
    return 2 if ("v7" in kind or "tpu7" in kind) else 1


def _round_up(a, m):
    return ((a + m - 1) // m) * m


# ---------------------------------------------------------------------------
# Kernel: packed x @ blockdiag(W1) + b1 -> ReLU -> @ blockdiag(W2) + b2 -> ReLU
#         -> @ blockdiag(W3) + b3   (gate + all BNs pre-folded into W/b)
# Each packed row holds `pack` independent samples; the block-diagonal weights
# keep them independent, so this is exactly `pack` MLP rows per packed row.
# ---------------------------------------------------------------------------
def fstab_kernel(x_ref, w1_ref, b1_ref, w2_ref, b2_ref, w3_ref, b3_ref, out_ref):
    x = x_ref[...].astype(w1_ref.dtype)          # in-kernel cast: no wrapper HBM pass

    h = jnp.dot(x, w1_ref[...], preferred_element_type=jnp.float32) + b1_ref[...]
    h = jnp.maximum(h, 0.0)                      # f32 accumulator

    h = jnp.dot(h.astype(w2_ref.dtype), w2_ref[...],
                preferred_element_type=jnp.float32) + b2_ref[...]
    h = jnp.maximum(h, 0.0)

    h = jnp.dot(h.astype(w3_ref.dtype), w3_ref[...],
                preferred_element_type=jnp.float32) + b3_ref[...]
    out_ref[...] = h.astype(out_ref.dtype)


# ---------------------------------------------------------------------------
# One-time parameter preparation:
#   fold gate + eval-mode BN into the linears (in f32), then expand to
#   block-diagonal packed weights and tiled biases.
# ---------------------------------------------------------------------------
def fold_params(raw, *, pack=None, compute_dtype=jnp.bfloat16):
    if pack is None:
        pack = _default_pack()

    def bn_affine(bn_packed):                     # bn_packed: (4, dim)
        gamma, beta, rmean, rvar = bn_packed
        scale = gamma / jnp.sqrt(rvar + EPS)
        shift = beta - rmean * scale
        return scale, shift

    gate = jnp.clip(raw["mu"][0] + 0.5, 0.0, 1.0)            # eval: z = mu
    s0, t0 = bn_affine(raw["bn0"])
    a0 = gate * s0                                            # x -> x*a0 + t0

    w1 = a0[:, None] * raw["w1"]
    b1 = t0 @ raw["w1"] + raw["b1"][0]

    s1, t1 = bn_affine(raw["bn1"])
    w2 = s1[:, None] * raw["w2"]
    b2 = t1 @ raw["w2"] + raw["b2"][0]

    s2, t2 = bn_affine(raw["bn2"])
    w3 = s2[:, None] * raw["w3"]
    b3 = t2 @ raw["w3"] + raw["b3"][0]

    n_cont = int(w1.shape[0])
    out_sz = int(w3.shape[1])

    def pack_w(w):
        # block_diag(W, ..., W) (pack copies) == kron(I_pack, W)
        return jnp.kron(jnp.eye(pack, dtype=w.dtype), w).astype(compute_dtype)

    def pack_b(b):
        return jnp.tile(b, pack)[None, :].astype(jnp.float32)

    return {
        "w1": pack_w(w1), "b1": pack_b(b1),
        "w2": pack_w(w2), "b2": pack_b(b2),
        "w3": pack_w(w3), "b3": pack_b(b3),
        "pack": int(pack), "n_cont": n_cont, "out_sz": out_sz,
    }


# ---------------------------------------------------------------------------
# Wrapper
# ---------------------------------------------------------------------------
def fstab_forward(x_cont, folded, *, tb_rows=8192, out_dtype=jnp.float32):
    """Fused eval-mode forward pass. `folded` comes from fold_params.
    tb_rows = target number of ORIGINAL batch rows per grid step."""
    B, n_cont = x_cont.shape
    p = folded["pack"]
    out_sz = folded["out_sz"]
    assert n_cont == folded["n_cont"], "feature-dim mismatch with folded params"

    w1, b1 = folded["w1"], folded["b1"]
    w2, b2 = folded["w2"], folded["b2"]
    w3, b3 = folded["w3"], folded["b3"]

    # Pad the batch only up to a multiple of the pack factor (needed for the
    # zero-copy packed reshape).  No dtype pass over x: the kernel casts.
    B_pad = _round_up(B, p)
    if B_pad != B:
        x_cont = jnp.pad(x_cont, ((0, B_pad - B), (0, 0)))
    rows = B_pad // p
    xp = x_cont.reshape(rows, p * n_cont)         # zero-copy, row-major

    lanes_in = p * n_cont
    lanes_out = w3.shape[1]                       # p * out_sz

    # Packed-row tile: big (amortizes ~0.35us/step fixed cost), clamped so the
    # double-buffered x + out tiles stay far below the 32 MiB scoped VMEM that
    # even v7x allows (weights add ~1-2 MiB on top).
    tbp = max(8, (tb_rows // p) // 8 * 8)
    bytes_per_packed_row = (lanes_in * x_cont.dtype.itemsize
                            + lanes_out * jnp.dtype(out_dtype).itemsize)
    vmem_budget = 24 * 1024 * 1024
    tbp = min(tbp, max(8, (vmem_budget // (2 * bytes_per_packed_row)) // 8 * 8))

    if rows <= tbp:
        if _num_tensorcores() > 1 and rows >= 16:
            # Keep grid >= 2 so the "parallel" axis can split across both TCs.
            tbp = _round_up(-(-rows // 2), 8)
        else:
            tbp = rows                            # single full-extent tile
    grid_n = -(-rows // tbp)                      # ceil-div; tail tile is masked

    def const_spec(arr):
        nd = arr.ndim
        return pl.BlockSpec(arr.shape, lambda i, _n=nd: (0,) * _n)

    out = pl.pallas_call(
        fstab_kernel,
        out_shape=jax.ShapeDtypeStruct((rows, lanes_out), out_dtype),
        grid=(grid_n,),
        in_specs=[
            pl.BlockSpec((tbp, lanes_in), lambda i: (i, 0)),   # x: tiled over batch
            const_spec(w1), const_spec(b1),
            const_spec(w2), const_spec(b2),
            const_spec(w3), const_spec(b3),
        ],
        out_specs=pl.BlockSpec((tbp, lanes_out), lambda i: (i, 0)),
        compiler_params=pltpu.CompilerParams(
            dimension_semantics=("parallel",),
            vmem_limit_bytes=32 * 1024 * 1024,
        ),
    )(xp, w1, b1, w2, b2, w3, b3)

    # Packed output rows are exactly the row-major (B_pad, out_sz) layout.
    return out.reshape(B_pad, out_sz)[:B]


# ---------------------------------------------------------------------------
# Pure-JAX reference (unfolded, f32) for correctness checking.
# ---------------------------------------------------------------------------
def reference_forward(x_cont, p):
    gate = jnp.clip(p["mu"][0] + 0.5, 0.0, 1.0)
    x = x_cont * gate
    g0, b0, m0, v0 = p["bn0"]
    x = (x - m0) / jnp.sqrt(v0 + EPS) * g0 + b0
    h = jnp.maximum(x @ p["w1"] + p["b1"][0], 0.0)
    g1, b1, m1, v1 = p["bn1"]
    h = (h - m1) / jnp.sqrt(v1 + EPS) * g1 + b1
    h = jnp.maximum(h @ p["w2"] + p["b2"][0], 0.0)
    g2, b2, m2, v2 = p["bn2"]
    h = (h - m2) / jnp.sqrt(v2 + EPS) * g2 + b2
    return h @ p["w3"] + p["b3"][0]


def make_params(key, n_cont, h1, h2, out_sz):
    ks = jax.random.split(key, 16)

    def bn_pack(k, dim):
        k1, k2, k3, k4 = jax.random.split(k, 4)
        gamma = 1.0 + 0.1 * jax.random.normal(k1, (dim,), jnp.float32)
        beta = 0.1 * jax.random.normal(k2, (dim,), jnp.float32)
        rmean = 0.05 * jax.random.normal(k3, (dim,), jnp.float32)
        rvar = 0.5 + jnp.abs(jax.random.normal(k4, (dim,), jnp.float32))
        return jnp.stack([gamma, beta, rmean, rvar], axis=0)  # (4, dim)

    return {
        "mu": 0.01 * jax.random.normal(ks[0], (1, n_cont), jnp.float32),
        "bn0": bn_pack(ks[1], n_cont),
        "w1": 0.1 * jax.random.normal(ks[2], (n_cont, h1), jnp.float32),
        "b1": 0.1 * jax.random.normal(ks[3], (1, h1), jnp.float32),
        "bn1": bn_pack(ks[4], h1),
        "w2": 0.1 * jax.random.normal(ks[5], (h1, h2), jnp.float32),
        "b2": 0.1 * jax.random.normal(ks[6], (1, h2), jnp.float32),
        "bn2": bn_pack(ks[7], h2),
        "w3": 0.1 * jax.random.normal(ks[8], (h2, out_sz), jnp.float32),
        "b3": 0.1 * jax.random.normal(ks[9], (1, out_sz), jnp.float32),
    }


if __name__ == "__main__":
    n_cont, h1, h2, out_sz = 16, 32, 32, 8
    key = jax.random.PRNGKey(0)
    kx, kp = jax.random.split(key)
    params = make_params(kp, n_cont, h1, h2, out_sz)

    folded_bf16 = fold_params(params, compute_dtype=jnp.bfloat16)
    folded_f32 = fold_params(params, compute_dtype=jnp.float32)

    # Case 1: pack-aligned batch (single / dual tile).  Case 2: ragged batch
    # (exercises the pack-alignment padding + full-extent small tile).
    for B in (256, 100):
        x_cont = jax.random.normal(jax.random.fold_in(kx, B), (B, n_cont), jnp.float32)
        ref = reference_forward(x_cont, params)

        out = jax.block_until_ready(fstab_forward(x_cont, folded_bf16, tb_rows=8192))
        assert out.shape == (B, out_sz)
        assert jnp.allclose(out, ref, rtol=3e-2, atol=3e-2), f"bf16 mismatch B={B}"

        out32 = jax.block_until_ready(fstab_forward(x_cont, folded_f32, tb_rows=8192))
        assert out32.shape == (B, out_sz)
        assert jnp.allclose(out32, ref, rtol=1e-2, atol=1e-2), f"f32 mismatch B={B}"

    # Case 3: force a multi-step grid (exercises the batch-tiled pipeline).
    B = 256
    x_cont = jax.random.normal(jax.random.fold_in(kx, 12345), (B, n_cont), jnp.float32)
    ref = reference_forward(x_cont, params)
    out_multi = jax.block_until_ready(fstab_forward(x_cont, folded_bf16, tb_rows=128))
    assert out_multi.shape == (B, out_sz)
    assert jnp.allclose(out_multi, ref, rtol=3e-2, atol=3e-2), "multi-step mismatch"

    print("KERNEL_OK")
</pallas_src>

<mosaic_0001>
module attributes {stable_mosaic.version = 11 : i64} {
  func.func @fstab_kernel(%arg0: i32, %arg1: memref<16x256xf32, #tpu.memory_space<vmem>>, %arg2: memref<256x512xbf16, #tpu.memory_space<vmem>>, %arg3: memref<1x512xf32, #tpu.memory_space<vmem>>, %arg4: memref<512x512xbf16, #tpu.memory_space<vmem>>, %arg5: memref<1x512xf32, #tpu.memory_space<vmem>>, %arg6: memref<512x128xbf16, #tpu.memory_space<vmem>>, %arg7: memref<1x128xf32, #tpu.memory_space<vmem>>, %arg8: memref<16x128xf32, #tpu.memory_space<vmem>>) attributes {dimension_semantics = [#tpu.dimension_semantics<parallel>], iteration_bounds = array<i64: 1>, scalar_prefetch = 0 : i64, scratch_operands = 0 : i64, tpu.core_type = #tpu.core_type<tc>, window_params = [{transform_indices = @transform_0, window_bounds = array<i64: 16, 256>}, {pipeline_mode = #tpu.pipeline_mode<synchronous>, transform_indices = @transform_1, window_bounds = array<i64: 256, 512>}, {pipeline_mode = #tpu.pipeline_mode<synchronous>, transform_indices = @transform_2, window_bounds = array<i64: 1, 512>}, {pipeline_mode = #tpu.pipeline_mode<synchronous>, transform_indices = @transform_3, window_bounds = array<i64: 512, 512>}, {pipeline_mode = #tpu.pipeline_mode<synchronous>, transform_indices = @transform_4, window_bounds = array<i64: 1, 512>}, {pipeline_mode = #tpu.pipeline_mode<synchronous>, transform_indices = @transform_5, window_bounds = array<i64: 512, 128>}, {pipeline_mode = #tpu.pipeline_mode<synchronous>, transform_indices = @transform_6, window_bounds = array<i64: 1, 128>}, {transform_indices = @transform_7, window_bounds = array<i64: 16, 128>}]} {
    %c0 = arith.constant 0 : index
    %c0_0 = arith.constant 0 : index
    %0 = vector.load %arg1[%c0, %c0_0] : memref<16x256xf32, #tpu.memory_space<vmem>>, vector<16x256xf32>
    %1 = arith.truncf %0 : vector<16x256xf32> to vector<16x256xbf16>
    %c0_1 = arith.constant 0 : index
    %c0_2 = arith.constant 0 : index
    %2 = vector.load %arg2[%c0_1, %c0_2] : memref<256x512xbf16, #tpu.memory_space<vmem>>, vector<256x512xbf16>
    %cst = arith.constant dense<0.000000e+00> : vector<16x512xf32>
    %3 = tpu.matmul %1, %2, %cst {dimension_numbers = #tpu.dot_dimension_numbers<[1], [0], [0], [1], [0, 0, 1, 1], [], []>} : vector<16x256xbf16>, vector<256x512xbf16>, vector<16x512xf32> -> vector<16x512xf32>
    %c0_3 = arith.constant 0 : index
    %c0_4 = arith.constant 0 : index
    %4 = vector.load %arg3[%c0_3, %c0_4] : memref<1x512xf32, #tpu.memory_space<vmem>>, vector<1x512xf32>
    %5 = vector.broadcast %4 : vector<1x512xf32> to vector<16x512xf32>
    %6 = arith.addf %3, %5 : vector<16x512xf32>
    %cst_5 = arith.constant 0.000000e+00 : f32
    %7 = vector.broadcast %cst_5 : f32 to vector<16x512xf32>
    %8 = arith.maximumf %6, %7 : vector<16x512xf32>
    %9 = arith.truncf %8 : vector<16x512xf32> to vector<16x512xbf16>
    %c0_6 = arith.constant 0 : index
    %c0_7 = arith.constant 0 : index
    %10 = vector.load %arg4[%c0_6, %c0_7] : memref<512x512xbf16, #tpu.memory_space<vmem>>, vector<512x512xbf16>
    %cst_8 = arith.constant dense<0.000000e+00> : vector<16x512xf32>
    %11 = tpu.matmul %9, %10, %cst_8 {dimension_numbers = #tpu.dot_dimension_numbers<[1], [0], [0], [1], [0, 0, 1, 1], [], []>} : vector<16x512xbf16>, vector<512x512xbf16>, vector<16x512xf32> -> vector<16x512xf32>
    %c0_9 = arith.constant 0 : index
    %c0_10 = arith.constant 0 : index
    %12 = vector.load %arg5[%c0_9, %c0_10] : memref<1x512xf32, #tpu.memory_space<vmem>>, vector<1x512xf32>
    %13 = vector.broadcast %12 : vector<1x512xf32> to vector<16x512xf32>
    %14 = arith.addf %11, %13 : vector<16x512xf32>
    %cst_11 = arith.constant 0.000000e+00 : f32
    %15 = vector.broadcast %cst_11 : f32 to vector<16x512xf32>
    %16 = arith.maximumf %14, %15 : vector<16x512xf32>
    %17 = arith.truncf %16 : vector<16x512xf32> to vector<16x512xbf16>
    %c0_12 = arith.constant 0 : index
    %c0_13 = arith.constant 0 : index
    %18 = vector.load %arg6[%c0_12, %c0_13] : memref<512x128xbf16, #tpu.memory_space<vmem>>, vector<512x128xbf16>
    %cst_14 = arith.constant dense<0.000000e+00> : vector<16x128xf32>
    %19 = tpu.matmul %17, %18, %cst_14 {dimension_numbers = #tpu.dot_dimension_numbers<[1], [0], [0], [1], [0, 0, 1, 1], [], []>} : vector<16x512xbf16>, vector<512x128xbf16>, vector<16x128xf32> -> vector<16x128xf32>
    %c0_15 = arith.constant 0 : index
    %c0_16 = arith.constant 0 : index
    %20 = vector.load %arg7[%c0_15, %c0_16] : memref<1x128xf32, #tpu.memory_space<vmem>>, vector<1x128xf32>
    %21 = vector.broadcast %20 : vector<1x128xf32> to vector<16x128xf32>
    %22 = arith.addf %19, %21 : vector<16x128xf32>
    %c0_17 = arith.constant 0 : index
    %c0_18 = arith.constant 0 : index
    %23 = vector.load %arg8[%c0_17, %c0_18] : memref<16x128xf32, #tpu.memory_space<vmem>>, vector<16x128xf32>
    tpu.vector_store %arg8[%c0_17, %c0_18], %22 {strides = array<i32>} : memref<16x128xf32, #tpu.memory_space<vmem>>, vector<16x128xf32>,
    return
  }
  func.func @transform_0(%arg0: i32) -> (i32, i32) {
    %c0_i32 = arith.constant 0 : i32
    %c0_i32_0 = arith.constant 0 : i32
    return %arg0, %c0_i32 : i32, i32
  }
  func.func @transform_1(%arg0: i32) -> (i32, i32) {
    %c0_i32 = arith.constant 0 : i32
    %c0_i32_0 = arith.constant 0 : i32
    %c0_i32_1 = arith.constant 0 : i32
    return %c0_i32, %c0_i32_0 : i32, i32
  }
  func.func @transform_2(%arg0: i32) -> (i32, i32) {
    %c0_i32 = arith.constant 0 : i32
    %c0_i32_0 = arith.constant 0 : i32
    %c0_i32_1 = arith.constant 0 : i32
    return %c0_i32, %c0_i32_0 : i32, i32
  }
  func.func @transform_3(%arg0: i32) -> (i32, i32) {
    %c0_i32 = arith.constant 0 : i32
    %c0_i32_0 = arith.constant 0 : i32
    %c0_i32_1 = arith.constant 0 : i32
    return %c0_i32, %c0_i32_0 : i32, i32
  }
  func.func @transform_4(%arg0: i32) -> (i32, i32) {
    %c0_i32 = arith.constant 0 : i32
    %c0_i32_0 = arith.constant 0 : i32
    %c0_i32_1 = arith.constant 0 : i32
    return %c0_i32, %c0_i32_0 : i32, i32
  }
  func.func @transform_5(%arg0: i32) -> (i32, i32) {
    %c0_i32 = arith.constant 0 : i32
    %c0_i32_0 = arith.constant 0 : i32
    %c0_i32_1 = arith.constant 0 : i32
    return %c0_i32, %c0_i32_0 : i32, i32
  }
  func.func @transform_6(%arg0: i32) -> (i32, i32) {
    %c0_i32 = arith.constant 0 : i32
    %c0_i32_0 = arith.constant 0 : i32
    %c0_i32_1 = arith.constant 0 : i32
    return %c0_i32, %c0_i32_0 : i32, i32
  }
  func.func @transform_7(%arg0: i32) -> (i32, i32) {
    %c0_i32 = arith.constant 0 : i32
    %c0_i32_0 = arith.constant 0 : i32
    return %arg0, %c0_i32 : i32, i32
  }
}

</mosaic_0001>

<bundles_post_ra>
// kernel: tpu_custom_call.1
= control target key start
LH: loop header
LB: loop body
LE: loop exit
PB: predicated region body
PF: predicated region fallthrough
CT: control target
= control target key end

     0   :  { %12 = vsyncpa [#allocation3], 0  ;;  %s2836_s0 = inlined_call_operand.hbm [shape: f32[16,256], index: 0, kind: input, shape index: {}]   ;;  %s2837_s1 = inlined_call_operand.hbm [shape: bf16[256,512], index: 1, kind: input, shape index: {}]   ;;  %s2838_s2 = inlined_call_operand.vmem [shape: f32[1,512], index: 2, kind: input, shape index: {}]   ;;  %s2839_s3 = inlined_call_operand.hbm [shape: bf16[512,512], index: 3, kind: input, shape index: {}]   ;;  %s2840_s4 = inlined_call_operand.vmem [shape: f32[1,512], index: 4, kind: input, shape index: {}]   ;;  %s2841_s5 = inlined_call_operand.hbm [shape: bf16[512,128], index: 5, kind: input, shape index: {}]   ;;  %s2842_s6 = inlined_call_operand.vmem [shape: f32[1,128], index: 6, kind: input, shape index: {}]   ;;  %s2843_s7 = inlined_call_operand.hbm [shape: f32[16,128], index: 7, kind: output, shape index: {}]  }
   0x1   :  { %13 = vsyncpa [#allocation6], 0 }
   0x2   :  { %14 = vsyncpa [#allocation9], 0 }
   0x3   :  { %15 = vsyncpa [#allocation4], 0  ;;  %s2667_s24 = smov [#allocation5]   ;;  %s2668_s26 = smov [#allocation2]  }
   0x4   :  { %s33_s25 = sshll.u32 %s2667_s24, 4  ;;  %s21_s27 = sshll.u32 %s2668_s26, 4  ;;  %s34_s25 = int_to_ptr.vmem [resolvable:$true] %s33_s25  ;;  %s2718_s27 = int_to_ptr.vmem [resolvable:$true] %s21_s27 }
   0x5   :  { %s2549_s30 = scalar_lea.hbm %s2837_s1, 8192 }
   0x6   :  { %p2550_p0 = scmp.ne.s32.totalorder %s2837_s1, %s2549_s30  ;;  %p2553_p1 = scmp.lt.u32.totalorder %s2549_s30, %s2837_s1 }
   0x8   :  { %p2555_p2 = pnand %p2553_p1, %p2550_p0 }
   0xa   :  { %2558 = shalt.err (!%p2555_p2)
}
   0xb   :  { %s2559_s12 = scalar_lea.vmem %s34_s25, 8192  ;;  %p2564_p4 = scmp.lt.s32.totalorder %s34_s25, %s34_s25 }
   0xc   :  { %p2560_p3 = scmp.ne.s32.totalorder %s34_s25, %s2559_s12  ;;  %p2565_p5 = scmp.lt.s32.totalorder %s2559_s12, %s2559_s12 }
   0xe   :  { %p2566_p6 = por %p2565_p5, %p2564_p4 }
  0x10   :  { %p2567_p7 = pnand %p2566_p6, %p2560_p3 }
  0x12   :  { %2570 = shalt.err (!%p2567_p7)
}
  0x13   :  { %s2669_s13 = smov 256   ;;  %s2670_s14 = smov 16  }
  0x14   :  { %39 = dma.hbm_to_vmem [thread:$0]  %s2837_s1, 8192, %s34_s25, [#allocation6], %s2669_s13, %s2669_s13, %s2670_s14  }
  0x15   :  { %s2571_s19 = scalar_lea.hbm %s2836_s0, 512 }
  0x16   :  { %p2572_p8 = scmp.ne.s32.totalorder %s2836_s0, %s2571_s19  ;;  %p2575_p9 = scmp.lt.u32.totalorder %s2571_s19, %s2836_s0 }
  0x18   :  { %p2577_p10 = pnand %p2575_p9, %p2572_p8 }
  0x1a   :  { %2580 = shalt.err (!%p2577_p10)
}
  0x1b   :  { %s2581_s24 = scalar_lea.vmem %s2718_s27, 512  ;;  %p2586_p12 = scmp.lt.s32.totalorder %s2718_s27, %s2718_s27 }
  0x1c   :  { %p2582_p11 = scmp.ne.s32.totalorder %s2718_s27, %s2581_s24  ;;  %p2587_p13 = scmp.lt.s32.totalorder %s2581_s24, %s2581_s24 }
  0x1e   :  { %p2588_p0 = por %p2587_p13, %p2586_p12 }
  0x20   :  { %p2589_p1 = pnand %p2588_p0, %p2582_p11 }
  0x22   :  { %2592 = shalt.err (!%p2589_p1)
}
  0x23   :  { %27 = dma.hbm_to_vmem [thread:$0]  %s2836_s0, 512, %s2718_s27, [#allocation3], %s2669_s13, %s2669_s13, %s2670_s14  }
  0x24   :  { %s2671_s26 = smov [#allocation7]   ;;  %s2672_s29 = smov [#allocation8]  }
  0x25   :  { %s47_s28 = sshll.u32 %s2671_s26, 4  ;;  %s61_s30 = sshll.u32 %s2672_s29, 4  ;;  %s48_s28 = int_to_ptr.vmem [resolvable:$true] %s47_s28  ;;  %s2755_s30 = int_to_ptr.vmem [resolvable:$true] %s61_s30 }
  0x26   :  { %s2593_s10 = scalar_lea.hbm %s2839_s3, 16384 }
  0x27   :  { %p2594_p2 = scmp.ne.s32.totalorder %s2839_s3, %s2593_s10  ;;  %p2597_p3 = scmp.lt.u32.totalorder %s2593_s10, %s2839_s3 }
  0x29   :  { %p2599_p4 = pnand %p2597_p3, %p2594_p2 }
  0x2b   :  { %2602 = shalt.err (!%p2599_p4)
}
  0x2c   :  { %s2603_s0 = scalar_lea.vmem %s48_s28, 16384  ;;  %p2608_p6 = scmp.lt.s32.totalorder %s48_s28, %s48_s28 }
  0x2d   :  { %p2604_p5 = scmp.ne.s32.totalorder %s48_s28, %s2603_s0  ;;  %p2609_p7 = scmp.lt.s32.totalorder %s2603_s0, %s2603_s0 }
  0x2f   :  { %p2610_p8 = por %p2609_p7, %p2608_p6 }
  0x31   :  { %p2611_p9 = pnand %p2610_p8, %p2604_p5 }
  0x33   :  { %2614 = shalt.err (!%p2611_p9)
}
  0x34   :  { %53 = dma.hbm_to_vmem [thread:$0]  %s2839_s3, 16384, %s48_s28, [#allocation6], %s2669_s13, %s2669_s13, %s2670_s14  }
  0x35   :  { %s2615_s20 = scalar_lea.hbm %s2841_s5, 4096 }
  0x36   :  { %p2616_p10 = scmp.ne.s32.totalorder %s2841_s5, %s2615_s20  ;;  %p2619_p11 = scmp.lt.u32.totalorder %s2615_s20, %s2841_s5 }
  0x38   :  { %p2621_p12 = pnand %p2619_p11, %p2616_p10 }
  0x3a   :  { %2624 = shalt.err (!%p2621_p12)
}
  0x3b   :  { %s2625_s1 = scalar_lea.vmem %s2755_s30, 4096  ;;  %p2630_p0 = scmp.lt.s32.totalorder %s2755_s30, %s2755_s30 }
  0x3c   :  { %p2626_p13 = scmp.ne.s32.totalorder %s2755_s30, %s2625_s1  ;;  %p2631_p1 = scmp.lt.s32.totalorder %s2625_s1, %s2625_s1 }
  0x3e   :  { %p2632_p2 = por %p2631_p1, %p2630_p0 }
  0x40   :  { %p2633_p3 = pnand %p2632_p2, %p2626_p13 }
  0x42   :  { %2636 = shalt.err (!%p2633_p3)
}
  0x43   :  { %s2673_s3 = smov 64   ;;  %s2674_s13 = smov 4  }
  0x44   :  { %67 = dma.hbm_to_vmem [thread:$0]  %s2841_s5, 4096, %s2755_s30, [#allocation9], %s2673_s3, %s2673_s3, %s2674_s13  }
  0x45   :  { %2659 = dma.done.wait [#allocation3], 512  }
  0x46   :  { %2660 = vsyncadd [#allocation3], 4294966784 }
  0x47   :  { %2661 = dma.done.wait [#allocation6], 24576  }
  0x48   :  { %2662 = vsyncadd [#allocation6], 4294942720 }
  0x49   :  { %2663 = dma.done.wait [#allocation9], 4096  }
  0x4a   :  { %2664 = vsyncadd [#allocation9], 4294963200  ;;  %v2229_v0 = vld [vmem:[#allocation5 + $0x4] ss:$16 sps:$4 sm:$0xff]   ;;  %v2231_v1 = vld [vmem:[#allocation5] ss:$16 sps:$4 sm:$0xff]  }
  0x4b   :  { %495 = vmatprep.subr.bf16.mxu0 %v2229_v0  ;;  %v2232_v2 = vld [vmem:[#allocation5 + $0x24] ss:$16 sps:$4 sm:$0xff]   ;;  %v2234_v3 = vld [vmem:[#allocation5 + $0x20] ss:$16 sps:$4 sm:$0xff]   ;;  %v2276_v13 = vld [vmem:[#allocation5 + $0xc] ss:$16 sps:$4 sm:$0xff]  }
  0x4c   :  { %496 = vmatpush1.bf16.msra.mxu0 %v2231_v1  ;;  %v2235_v4 = vld [vmem:[#allocation5 + $0x44] ss:$16 sps:$4 sm:$0xff]   ;;  %v2237_v5 = vld [vmem:[#allocation5 + $0x40] ss:$16 sps:$4 sm:$0xff]   ;;  %v2279_v14 = vld [vmem:[#allocation5 + $0x8] ss:$16 sps:$4 sm:$0xff]   ;;  %538 = vmatprep.subr.bf16.mxu1 %v2276_v13 }
  0x4d   :  { %497 = vmatprep.subr.bf16.mxu0 %v2232_v2  ;;  %v2238_v6 = vld [vmem:[#allocation5 + $0x64] ss:$16 sps:$4 sm:$0xff]   ;;  %v2240_v7 = vld [vmem:[#allocation5 + $0x60] ss:$16 sps:$4 sm:$0xff]   ;;  %v84_v15 = vld [vmem:[#allocation2 + $0x8] sm:$0xff]  ;;  %539 = vmatpush1.bf16.msra.mxu1 %v2279_v14  ;;  %s2675_s30 = smov [#allocation10]  }
  0x4e   :  { %v2241_v8 = vld [vmem:[#allocation5 + $0x84] ss:$16 sps:$4 sm:$0xff]   ;;  %v2243_v9 = vld [vmem:[#allocation5 + $0x80] ss:$16 sps:$4 sm:$0xff]   ;;  %v86_v18 = vld [vmem:[#allocation2 + $0x18] sm:$0xff]  ;;  %s1919_s8 = sshll.u32 %s2675_s30, 4  ;;  %s1920_s8 = int_to_ptr.vmem [resolvable:$true] %s1919_s8 }
  0x4f   :  { %v2244_v10 = vld [vmem:[#allocation5 + $0xa4] ss:$16 sps:$4 sm:$0xff]   ;;  %v2246_v11 = vld [vmem:[#allocation5 + $0xa0] ss:$16 sps:$4 sm:$0xff]   ;;  %v88_v19 = vpack.c.bf16 %v86_v18, %v84_v15  ;;  %v2280_v20 = vld [vmem:[#allocation5 + $0x2c] ss:$16 sps:$4 sm:$0xff]   ;;  %p2642_p5 = scmp.lt.s32.totalorder %s1920_s8, %s1920_s8 }
  0x50   :  { %498 = vmatpush1.bf16.msra.mxu0 %v2234_v3  ;;  %v2247_v12 = vld [vmem:[#allocation5 + $0xc4] ss:$16 sps:$4 sm:$0xff]   ;;  %v2249_v16 = vld [vmem:[#allocation5 + $0xc0] ss:$16 sps:$4 sm:$0xff]   ;;  %v2282_v21 = vld [vmem:[#allocation5 + $0x28] ss:$16 sps:$4 sm:$0xff]   ;;  %540 = vmatprep.subr.bf16.mxu1 %v2280_v20 }
  0x51   :  { %499 = vmatprep.subr.bf16.mxu0 %v2235_v4  ;;  %v2250_v17 = vld [vmem:[#allocation5 + $0xe4] ss:$16 sps:$4 sm:$0xff]   ;;  %527 = vmatprep.mubr.bf16.mxu0 %v88_v19  ;;  %v2283_v22 = vld [vmem:[#allocation5 + $0x4c] ss:$16 sps:$4 sm:$0xff]   ;;  %v2252_v23 = vld [vmem:[#allocation5 + $0xe0] ss:$16 sps:$4 sm:$0xff]  }
  0x52   :  { %v2253_v24 = vld [vmem:[#allocation5 + $0x104] ss:$16 sps:$4 sm:$0xff]   ;;  %570 = vmatprep.mubr.bf16.mxu1 %v88_v19  ;;  %541 = vmatpush1.bf16.msra.mxu1 %v2282_v21  ;;  %v2285_v25 = vld [vmem:[#allocation5 + $0x48] ss:$16 sps:$4 sm:$0xff]   ;;  %v2286_v26 = vld [vmem:[#allocation5 + $0x6c] ss:$16 sps:$4 sm:$0xff]  }
  0x53   :  { %542 = vmatprep.subr.bf16.mxu1 %v2283_v22  ;;  %v2255_v27 = vld [vmem:[#allocation5 + $0x100] ss:$16 sps:$4 sm:$0xff]   ;;  %v2256_v28 = vld [vmem:[#allocation5 + $0x124] ss:$16 sps:$4 sm:$0xff]   ;;  %v2288_v29 = vld [vmem:[#allocation5 + $0x68] ss:$16 sps:$4 sm:$0xff]  }
  0x54   :  { %500 = vmatpush1.bf16.msra.mxu0 %v2237_v5  ;;  %v2289_v30 = vld [vmem:[#allocation5 + $0x8c] ss:$16 sps:$4 sm:$0xff]   ;;  %v2258_v31 = vld [vmem:[#allocation5 + $0x120] ss:$16 sps:$4 sm:$0xff]   ;;  %v2259_v32 = vld [vmem:[#allocation5 + $0x144] ss:$16 sps:$4 sm:$0xff]  }
  0x55   :  { %501 = vmatprep.subr.bf16.mxu0 %v2238_v6  ;;  %v2291_v33 = vld [vmem:[#allocation5 + $0x88] ss:$16 sps:$4 sm:$0xff]   ;;  %v2292_v34 = vld [vmem:[#allocation5 + $0xac] ss:$16 sps:$4 sm:$0xff]   ;;  %v2261_v35 = vld [vmem:[#allocation5 + $0x140] ss:$16 sps:$4 sm:$0xff]  }
  0x56   :  { %543 = vmatpush1.bf16.msra.mxu1 %v2285_v25  ;;  %v2262_v36 = vld [vmem:[#allocation5 + $0x164] ss:$16 sps:$4 sm:$0xff]   ;;  %v2294_v37 = vld [vmem:[#allocation5 + $0xa8] ss:$16 sps:$4 sm:$0xff]   ;;  %v2295_v38 = vld [vmem:[#allocation5 + $0xcc] ss:$16 sps:$4 sm:$0xff]  }
  0x57   :  { %544 = vmatprep.subr.bf16.mxu1 %v2286_v26  ;;  %v2264_v39 = vld [vmem:[#allocation5 + $0x160] ss:$16 sps:$4 sm:$0xff]   ;;  %v2265_v40 = vld [vmem:[#allocation5 + $0x184] ss:$16 sps:$4 sm:$0xff]   ;;  %v2297_v41 = vld [vmem:[#allocation5 + $0xc8] ss:$16 sps:$4 sm:$0xff]  }
  0x58   :  { %502 = vmatpush1.bf16.msra.mxu0 %v2240_v7  ;;  %v2298_v42 = vld [vmem:[#allocation5 + $0xec] ss:$16 sps:$4 sm:$0xff]   ;;  %v2267_v43 = vld [vmem:[#allocation5 + $0x180] ss:$16 sps:$4 sm:$0xff]   ;;  %v2268_v44 = vld [vmem:[#allocation5 + $0x1a4] ss:$16 sps:$4 sm:$0xff]  }
  0x59   :  { %503 = vmatprep.subr.bf16.mxu0 %v2241_v8  ;;  %v2300_v45 = vld [vmem:[#allocation5 + $0xe8] ss:$16 sps:$4 sm:$0xff]   ;;  %v2301_v46 = vld [vmem:[#allocation5 + $0x10c] ss:$16 sps:$4 sm:$0xff]   ;;  %v2270_v47 = vld [vmem:[#allocation5 + $0x1a0] ss:$16 sps:$4 sm:$0xff]  }
  0x5a   :  { %545 = vmatpush1.bf16.msra.mxu1 %v2288_v29  ;;  %v2271_v48 = vld [vmem:[#allocation5 + $0x1c4] ss:$16 sps:$4 sm:$0xff]   ;;  %v2303_v49 = vld [vmem:[#allocation5 + $0x108] ss:$16 sps:$4 sm:$0xff]   ;;  %v2304_v50 = vld [vmem:[#allocation5 + $0x12c] ss:$16 sps:$4 sm:$0xff]  }
  0x5b   :  { %546 = vmatprep.subr.bf16.mxu1 %v2289_v30  ;;  %v2273_v51 = vld [vmem:[#allocation5 + $0x1c0] ss:$16 sps:$4 sm:$0xff]   ;;  %v2274_v52 = vld [vmem:[#allocation5 + $0x1e4] ss:$16 sps:$4 sm:$0xff]   ;;  %v2306_v53 = vld [vmem:[#allocation5 + $0x128] ss:$16 sps:$4 sm:$0xff]  }
  0x5c   :  { %504 = vmatpush1.bf16.msra.mxu0 %v2243_v9  ;;  %v2307_v54 = vld [vmem:[#allocation5 + $0x14c] ss:$16 sps:$4 sm:$0xff]   ;;  %v2278_v55 = vld [vmem:[#allocation5 + $0x1e0] ss:$16 sps:$4 sm:$0xff]   ;;  %v2309_v58 = vld [vmem:[#allocation5 + $0x148] ss:$16 sps:$4 sm:$0xff]  }
  0x5d   :  { %505 = vmatprep.subr.bf16.mxu0 %v2244_v10  ;;  %v83_v56 = vld [vmem:[#allocation2] sm:$0xff]  ;;  %v85_v57 = vld [vmem:[#allocation2 + $0x10] sm:$0xff]  ;;  %v2310_v60 = vld [vmem:[#allocation5 + $0x16c] ss:$16 sps:$4 sm:$0xff]  }
  0x5e   :  { %547 = vmatpush1.bf16.msra.mxu1 %v2291_v33  ;;  %v2327_v59 = vld [vmem:[#allocation7 + $0x4] ss:$16 sps:$4 sm:$0xff]   ;;  %v87_v61 = vpack.c.bf16 %v85_v57, %v83_v56  ;;  %v2312_v62 = vld [vmem:[#allocation5 + $0x168] ss:$16 sps:$4 sm:$0xff]   ;;  %v2325_v63 = vld [vmem:[#allocation7] ss:$16 sps:$4 sm:$0xff]  }
  0x5f   :  { %548 = vmatprep.subr.bf16.mxu1 %v2292_v34  ;;  %v2333_v0 = vld [vmem:[#allocation7 + $0x24] ss:$16 sps:$4 sm:$0xff]   ;;  %v2313_v1 = vld [vmem:[#allocation5 + $0x18c] ss:$16 sps:$4 sm:$0xff]   ;;  %v2315_v2 = vld [vmem:[#allocation5 + $0x188] ss:$16 sps:$4 sm:$0xff]  }
  0x60   :  { %506 = vmatpush1.bf16.msra.mxu0 %v2246_v11  ;;  %v2331_v3 = vld [vmem:[#allocation7 + $0x20] ss:$16 sps:$4 sm:$0xff]   ;;  %v2339_v4 = vld [vmem:[#allocation7 + $0x44] ss:$16 sps:$4 sm:$0xff]   ;;  %v2316_v5 = vld [vmem:[#allocation5 + $0x1ac] ss:$16 sps:$4 sm:$0xff]  }
  0x61   :  { %507 = vmatprep.subr.bf16.mxu0 %v2247_v12  ;;  %v2318_v6 = vld [vmem:[#allocation5 + $0x1a8] ss:$16 sps:$4 sm:$0xff]   ;;  %v2337_v7 = vld [vmem:[#allocation7 + $0x40] ss:$16 sps:$4 sm:$0xff]   ;;  %v2345_v8 = vld [vmem:[#allocation7 + $0x64] ss:$16 sps:$4 sm:$0xff]  }
  0x62   :  { %549 = vmatpush1.bf16.msra.mxu1 %v2294_v37  ;;  %v2319_v9 = vld [vmem:[#allocation5 + $0x1cc] ss:$16 sps:$4 sm:$0xff]   ;;  %v2321_v10 = vld [vmem:[#allocation5 + $0x1c8] ss:$16 sps:$4 sm:$0xff]   ;;  %v2343_v11 = vld [vmem:[#allocation7 + $0x60] ss:$16 sps:$4 sm:$0xff]  }
  0x63   :  { %550 = vmatprep.subr.bf16.mxu1 %v2295_v38  ;;  %v2351_v12 = vld [vmem:[#allocation7 + $0x84] ss:$16 sps:$4 sm:$0xff]   ;;  %v2322_v13 = vld [vmem:[#allocation5 + $0x1ec] ss:$16 sps:$4 sm:$0xff]   ;;  %v2324_v14 = vld [vmem:[#allocation5 + $0x1e8] ss:$16 sps:$4 sm:$0xff]  }
  0x64   :  { %508 = vmatpush1.bf16.msra.mxu0 %v2249_v16  ;;  %v2349_v15 = vld [vmem:[#allocation7 + $0x80] ss:$16 sps:$4 sm:$0xff]   ;;  %v2357_v16 = vld [vmem:[#allocation7 + $0xa4] ss:$16 sps:$4 sm:$0xff]   ;;  %v2328_v19 = vld [vmem:[#allocation7 + $0x8] ss:$16 sps:$4 sm:$0xff]  }
  0x65   :  { %509 = vmatprep.subr.bf16.mxu0 %v2250_v17  ;;  %v2330_v17 = vld [vmem:[#allocation7 + $0xc] ss:$16 sps:$4 sm:$0xff]   ;;  %v2355_v18 = vld [vmem:[#allocation7 + $0xa0] ss:$16 sps:$4 sm:$0xff]   ;;  %v2363_v20 = vld [vmem:[#allocation7 + $0xc4] ss:$16 sps:$4 sm:$0xff]  }
  0x66   :  { %551 = vmatpush1.bf16.msra.mxu1 %v2297_v41  ;;  %v2336_v21 = vld [vmem:[#allocation7 + $0x2c] ss:$16 sps:$4 sm:$0xff]   ;;  %v2361_v22 = vld [vmem:[#allocation7 + $0xc0] ss:$16 sps:$4 sm:$0xff]   ;;  %v2394_v57 = vld [vmem:[#allocation7 + $0x168] ss:$16 sps:$4 sm:$0xff]  }
  0x67   :  { %552 = vmatprep.subr.bf16.mxu1 %v2298_v42  ;;  %v2342_v25 = vld [vmem:[#allocation7 + $0x4c] ss:$16 sps:$4 sm:$0xff]   ;;  %v2367_v26 = vld [vmem:[#allocation7 + $0xe0] ss:$16 sps:$4 sm:$0xff]  }
  0x68   :  { %510 = vmatpush1.bf16.msra.mxu0 %v2252_v23  ;;  %v2334_v23 = vld [vmem:[#allocation7 + $0x28] ss:$16 sps:$4 sm:$0xff]   ;;  %v2348_v29 = vld [vmem:[#allocation7 + $0x6c] ss:$16 sps:$4 sm:$0xff]   ;;  %v2373_v30 = vld [vmem:[#allocation7 + $0x100] ss:$16 sps:$4 sm:$0xff]  }
  0x69   :  { %511 = vmatprep.subr.bf16.mxu0 %v2253_v24  ;;  %v2369_v24 = vld [vmem:[#allocation7 + $0xe4] ss:$16 sps:$4 sm:$0xff]   ;;  %v2354_v33 = vld [vmem:[#allocation7 + $0x8c] ss:$16 sps:$4 sm:$0xff]   ;;  %v2379_v34 = vld [vmem:[#allocation7 + $0x120] ss:$16 sps:$4 sm:$0xff]  }
  0x6a   :  { %553 = vmatpush1.bf16.msra.mxu1 %v2300_v45  ;;  %v2360_v37 = vld [vmem:[#allocation7 + $0xac] ss:$16 sps:$4 sm:$0xff]   ;;  %v2385_v38 = vld [vmem:[#allocation7 + $0x140] ss:$16 sps:$4 sm:$0xff]  }
  0x6b   :  { %554 = vmatprep.subr.bf16.mxu1 %v2301_v46  ;;  %v2366_v41 = vld [vmem:[#allocation7 + $0xcc] ss:$16 sps:$4 sm:$0xff]   ;;  %v2391_v42 = vld [vmem:[#allocation7 + $0x160] ss:$16 sps:$4 sm:$0xff]  }
  0x6c   :  { %512 = vmatpush1.bf16.msra.mxu0 %v2255_v27  ;;  %v2340_v27 = vld [vmem:[#allocation7 + $0x48] ss:$16 sps:$4 sm:$0xff]   ;;  %v2372_v45 = vld [vmem:[#allocation7 + $0xec] ss:$16 sps:$4 sm:$0xff]   ;;  %v2397_v46 = vld [vmem:[#allocation7 + $0x180] ss:$16 sps:$4 sm:$0xff]  }
  0x6d   :  { %513 = vmatprep.subr.bf16.mxu0 %v2256_v28  ;;  %v2375_v28 = vld [vmem:[#allocation7 + $0x104] ss:$16 sps:$4 sm:$0xff]   ;;  %v2396_v56 = vld [vmem:[#allocation7 + $0x16c] ss:$16 sps:$4 sm:$0xff]  }
  0x6e   :  { %555 = vmatpush1.bf16.msra.mxu1 %v2303_v49  ;;  %v2378_v49 = vld [vmem:[#allocation7 + $0x10c] ss:$16 sps:$4 sm:$0xff]  }
  0x6f   :  { %556 = vmatprep.subr.bf16.mxu1 %v2304_v50  ;;  %v2403_v50 = vld [vmem:[#allocation7 + $0x1a0] ss:$16 sps:$4 sm:$0xff]  }
  0x70   :  { %514 = vmatpush1.bf16.msra.mxu0 %v2258_v31  ;;  %v2346_v31 = vld [vmem:[#allocation7 + $0x68] ss:$16 sps:$4 sm:$0xff]  }
  0x71   :  { %515 = vmatprep.subr.bf16.mxu0 %v2259_v32  ;;  %v2381_v32 = vld [vmem:[#allocation7 + $0x124] ss:$16 sps:$4 sm:$0xff]  }
  0x72   :  { %557 = vmatpush1.bf16.msra.mxu1 %v2306_v53  ;;  %v2382_v53 = vld [vmem:[#allocation7 + $0x128] ss:$16 sps:$4 sm:$0xff]  }
  0x73   :  { %558 = vmatprep.subr.bf16.mxu1 %v2307_v54  ;;  %v2390_v54 = vld [vmem:[#allocation7 + $0x14c] ss:$16 sps:$4 sm:$0xff]  }
  0x74   :  { %516 = vmatpush1.bf16.msra.mxu0 %v2261_v35  ;;  %v2352_v35 = vld [vmem:[#allocation7 + $0x88] ss:$16 sps:$4 sm:$0xff]  }
  0x75   :  { %517 = vmatprep.subr.bf16.mxu0 %v2262_v36  ;;  %v2387_v36 = vld [vmem:[#allocation7 + $0x144] ss:$16 sps:$4 sm:$0xff]  }
  0x76   :  { %559 = vmatpush1.bf16.msra.mxu1 %v2309_v58  ;;  %v2402_v58 = vld [vmem:[#allocation7 + $0x18c] ss:$16 sps:$4 sm:$0xff]  }
  0x77   :  { %560 = vmatprep.subr.bf16.mxu1 %v2310_v60  ;;  %v2408_v60 = vld [vmem:[#allocation7 + $0x1ac] ss:$16 sps:$4 sm:$0xff]  }
  0x78   :  { %518 = vmatpush1.bf16.msra.mxu0 %v2264_v39  ;;  %v2358_v39 = vld [vmem:[#allocation7 + $0xa8] ss:$16 sps:$4 sm:$0xff]  }
  0x79   :  { %519 = vmatprep.subr.bf16.mxu0 %v2265_v40  ;;  %v2393_v40 = vld [vmem:[#allocation7 + $0x164] ss:$16 sps:$4 sm:$0xff]  }
  0x7a   :  { %561 = vmatpush1.bf16.msra.mxu1 %v2312_v62  ;;  %v2411_v62 = vld [vmem:[#allocation7 + $0x1c4] ss:$16 sps:$4 sm:$0xff]  }
  0x7b   :  { %562 = vmatprep.subr.bf16.mxu1 %v2313_v1  ;;  %v2412_v1 = vld [vmem:[#allocation7 + $0x1c8] ss:$16 sps:$4 sm:$0xff]  }
  0x7c   :  { %520 = vmatpush1.bf16.msra.mxu0 %v2267_v43  ;;  %v2364_v43 = vld [vmem:[#allocation7 + $0xc8] ss:$16 sps:$4 sm:$0xff]  }
  0x7d   :  { %521 = vmatprep.subr.bf16.mxu0 %v2268_v44  ;;  %v2399_v44 = vld [vmem:[#allocation7 + $0x184] ss:$16 sps:$4 sm:$0xff]  }
  0x7e   :  { %563 = vmatpush1.bf16.msra.mxu1 %v2315_v2  ;;  %v2417_v2 = vld [vmem:[#allocation7 + $0x1e4] ss:$16 sps:$4 sm:$0xff]  }
  0x7f   :  { %564 = vmatprep.subr.bf16.mxu1 %v2316_v5  ;;  %v2418_v5 = vld [vmem:[#allocation7 + $0x1e8] ss:$16 sps:$4 sm:$0xff]  }
  0x80   :  { %522 = vmatpush1.bf16.msra.mxu0 %v2270_v47  ;;  %v2370_v47 = vld [vmem:[#allocation7 + $0xe8] ss:$16 sps:$4 sm:$0xff]  }
  0x81   :  { %523 = vmatprep.subr.bf16.mxu0 %v2271_v48  ;;  %v2405_v48 = vld [vmem:[#allocation7 + $0x1a4] ss:$16 sps:$4 sm:$0xff]  }
  0x82   :  { %565 = vmatpush1.bf16.msra.mxu1 %v2318_v6  ;;  %v2423_v6 = vld [vmem:[#allocation7 + $0x204] ss:$16 sps:$4 sm:$0xff]  }
  0x83   :  { %566 = vmatprep.subr.bf16.mxu1 %v2319_v9 }
  0x84   :  { %524 = vmatpush1.bf16.msra.mxu0 %v2273_v51  ;;  %v2376_v51 = vld [vmem:[#allocation7 + $0x108] ss:$16 sps:$4 sm:$0xff]  }
  0x85   :  { %525 = vmatprep.subr.bf16.mxu0 %v2274_v52  ;;  %v2384_v52 = vld [vmem:[#allocation7 + $0x12c] ss:$16 sps:$4 sm:$0xff]  }
  0x86   :  { %567 = vmatpush1.bf16.msra.mxu1 %v2321_v10 }
  0x87   :  { %568 = vmatprep.subr.bf16.mxu1 %v2322_v13 }
  0x88   :  { %526 = vmatpush1.bf16.msra.mxu0 %v2278_v55  ;;  %v2388_v55 = vld [vmem:[#allocation7 + $0x148] ss:$16 sps:$4 sm:$0xff]  }
  0x89   :  { %1383 = vmatprep.subr.bf16.mxu0 %v2327_v59  ;;  %v2400_v59 = vld [vmem:[#allocation7 + $0x188] ss:$16 sps:$4 sm:$0xff]  }
  0x8a   :  { %569 = vmatpush1.bf16.msra.mxu1 %v2324_v14 }
  0x8b   :  { %528 = vmatmul.mubr.bf16.vlgmr.msra.gmra.mrb[0].mxu0 %v87_v61  ;;  %1469 = vmatprep.subr.bf16.mxu1 %v2330_v17 }
  0x8c   :  { %1384 = vmatpush1.bf16.msra.mxu0 %v2325_v63  ;;  %v2414_v63 = vld [vmem:[#allocation7 + $0x1cc] ss:$16 sps:$4 sm:$0xff]  }
  0x8d   :  { %1385 = vmatprep.subr.bf16.mxu0 %v2333_v0  ;;  %571 = vmatmul.mubr.bf16.vlgmr.msra.gmra.mrb[0].mxu1 %v87_v61  ;;  %v2406_v61 = vld [vmem:[#allocation7 + $0x1a8] ss:$16 sps:$4 sm:$0xff]   ;;  %v2409_v0 = vld [vmem:[#allocation7 + $0x1c0] ss:$16 sps:$4 sm:$0xff]  }
  0x8e   :  { %1470 = vmatpush1.bf16.msra.mxu1 %v2328_v19 }
  0x8f   :  { %1471 = vmatprep.subr.bf16.mxu1 %v2336_v21 }
  0x90   :  { %1386 = vmatpush1.bf16.msra.mxu0 %v2331_v3  ;;  %v2420_v3 = vld [vmem:[#allocation7 + $0x1ec] ss:$16 sps:$4 sm:$0xff]  }
  0x91   :  { %1387 = vmatprep.subr.bf16.mxu0 %v2339_v4  ;;  %v2415_v4 = vld [vmem:[#allocation7 + $0x1e0] ss:$16 sps:$4 sm:$0xff]  }
  0x92   :  { %1472 = vmatpush1.bf16.msra.mxu1 %v2334_v23 }
  0x93   :  { %1473 = vmatprep.subr.bf16.mxu1 %v2342_v25 }
  0x94   :  { %1388 = vmatpush1.bf16.msra.mxu0 %v2337_v7  ;;  %v2426_v7 = vld [vmem:[#allocation7 + $0x20c] ss:$16 sps:$4 sm:$0xff]  }
  0x95   :  { %1389 = vmatprep.subr.bf16.mxu0 %v2345_v8  ;;  %v155_v8 = vlaneseq }
  0x96   :  { %1474 = vmatpush1.bf16.msra.mxu1 %v2340_v27 }
  0x97   :  { %1475 = vmatprep.subr.bf16.mxu1 %v2348_v29  ;;  %v2789_v9 = vshrl.u32 %v155_v8, 7  ;;  %v2421_v29 = vld [vmem:[#allocation7 + $0x200] ss:$16 sps:$4 sm:$0xff]   ;;  %v2460_v8 = vld [vmem:[#allocation7 + $0x2c8] ss:$16 sps:$4 sm:$0xff]  }
  0x98   :  { %1390 = vmatpush1.bf16.msra.mxu0 %v2343_v11  ;;  %v153_v11 = vld [vmem:[%s2838_s2] sm:$0xf] }
  0x99   :  { %1391 = vmatprep.subr.bf16.mxu0 %v2351_v12  ;;  %v157_v10 = vsub.s32 0, %v2789_v9  ;;  %v161_v12 = vsub.s32 1, %v2789_v9 }
  0x9a   :  { %1476 = vmatpush1.bf16.msra.mxu1 %v2346_v31  ;;  %v2429_v31 = vld [vmem:[#allocation7 + $0x224] ss:$16 sps:$4 sm:$0xff]  }
  0x9b   :  { %1477 = vmatprep.subr.bf16.mxu1 %v2354_v33  ;;  %v158_v13 = vrot.slane %v153_v11, %v157_v10  ;;  %v162_v14 = vrot.slane %v153_v11, %v161_v12  ;;  %v2427_v33 = vld [vmem:[#allocation7 + $0x220] ss:$16 sps:$4 sm:$0xff]  }
  0x9c   :  { %1392 = vmatpush1.bf16.msra.mxu0 %v2349_v15 }
  0x9d   :  { %1393 = vmatprep.subr.bf16.mxu0 %v2357_v16 }
  0x9e   :  { %1478 = vmatpush1.bf16.msra.mxu1 %v2352_v35  ;;  %v2435_v35 = vld [vmem:[#allocation7 + $0x244] ss:$16 sps:$4 sm:$0xff]  }
  0x9f   :  { %1479 = vmatprep.subr.bf16.mxu1 %v2360_v37  ;;  %v165_v37 = vsub.s32 2, %v2789_v9 }
  0xa0   :  { %1394 = vmatpush1.bf16.msra.mxu0 %v2355_v18 }
  0xa1   :  { %1395 = vmatprep.subr.bf16.mxu0 %v2363_v20 }
  0xa2   :  { %1480 = vmatpush1.bf16.msra.mxu1 %v2358_v39  ;;  %v2433_v39 = vld [vmem:[#allocation7 + $0x240] ss:$16 sps:$4 sm:$0xff]  }
  0xa3   :  { %1481 = vmatprep.subr.bf16.mxu1 %v2366_v41  ;;  %v2441_v41 = vld [vmem:[#allocation7 + $0x264] ss:$16 sps:$4 sm:$0xff]  }
  0xa4   :  { %1396 = vmatpush1.bf16.msra.mxu0 %v2361_v22 }
  0xa5   :  { %1397 = vmatprep.subr.bf16.mxu0 %v2369_v24 }
  0xa6   :  { %1482 = vmatpush1.bf16.msra.mxu1 %v2364_v43  ;;  %v166_v43 = vrot.slane %v153_v11, %v165_v37 }
  0xa7   :  { %1483 = vmatprep.subr.bf16.mxu1 %v2372_v45  ;;  %v2439_v45 = vld [vmem:[#allocation7 + $0x260] ss:$16 sps:$4 sm:$0xff]  }
  0xa8   :  { %1398 = vmatpush1.bf16.msra.mxu0 %v2367_v26 }
  0xa9   :  { %1399 = vmatprep.subr.bf16.mxu0 %v2375_v28 }
  0xaa   :  { %1484 = vmatpush1.bf16.msra.mxu1 %v2370_v47  ;;  %v2447_v47 = vld [vmem:[#allocation7 + $0x284] ss:$16 sps:$4 sm:$0xff]  }
  0xab   :  { %1485 = vmatprep.subr.bf16.mxu1 %v2378_v49 }
  0xac   :  { %1400 = vmatpush1.bf16.msra.mxu0 %v2373_v30  ;;  %v2424_v30 = vld [vmem:[#allocation7 + $0x208] ss:$16 sps:$4 sm:$0xff]  }
  0xad   :  { %1401 = vmatprep.subr.bf16.mxu0 %v2381_v32  ;;  %v2432_v32 = vld [vmem:[#allocation7 + $0x22c] ss:$16 sps:$4 sm:$0xff]  }
  0xae   :  { %1486 = vmatpush1.bf16.msra.mxu1 %v2376_v51 }
  0xaf   :  { %1487 = vmatprep.subr.bf16.mxu1 %v2384_v52 }
  0xb0   :  { %1402 = vmatpush1.bf16.msra.mxu0 %v2379_v34  ;;  %v2430_v34 = vld [vmem:[#allocation7 + $0x228] ss:$16 sps:$4 sm:$0xff]  }
  0xb1   :  { %1403 = vmatprep.subr.bf16.mxu0 %v2387_v36  ;;  %v2438_v36 = vld [vmem:[#allocation7 + $0x24c] ss:$16 sps:$4 sm:$0xff]  }
  0xb2   :  { %1488 = vmatpush1.bf16.msra.mxu1 %v2382_v53 }
  0xb3   :  { %1489 = vmatprep.subr.bf16.mxu1 %v2390_v54  ;;  %v2445_v54 = vld [vmem:[#allocation7 + $0x280] ss:$16 sps:$4 sm:$0xff]  }
  0xb4   :  { %1404 = vmatpush1.bf16.msra.mxu0 %v2385_v38  ;;  %v169_v38 = vsub.s32 3, %v2789_v9 }
  0xb5   :  { %1405 = vmatprep.subr.bf16.mxu0 %v2393_v40  ;;  %v2436_v40 = vld [vmem:[#allocation7 + $0x248] ss:$16 sps:$4 sm:$0xff]  }
  0xb6   :  { %1490 = vmatpush1.bf16.msra.mxu1 %v2388_v55  ;;  %v2448_v55 = vld [vmem:[#allocation7 + $0x288] ss:$16 sps:$4 sm:$0xff]  }
  0xb7   :  { %1491 = vmatprep.subr.bf16.mxu1 %v2396_v56 }
  0xb8   :  { %1406 = vmatpush1.bf16.msra.mxu0 %v2391_v42  ;;  %v2444_v42 = vld [vmem:[#allocation7 + $0x26c] ss:$16 sps:$4 sm:$0xff]  }
  0xb9   :  { %1407 = vmatprep.subr.bf16.mxu0 %v2399_v44  ;;  %v170_v44 = vrot.slane %v153_v11, %v169_v38  ;;  %v2465_v11 = vld [vmem:[#allocation7 + $0x2e4] ss:$16 sps:$4 sm:$0xff]  }
  0xba   :  { %1492 = vmatpush1.bf16.msra.mxu1 %v2394_v57 }
  0xbb   :  { %1493 = vmatprep.subr.bf16.mxu1 %v2402_v58 }
  0xbc   :  { %1408 = vmatpush1.bf16.msra.mxu0 %v2397_v46  ;;  %v2442_v46 = vld [vmem:[#allocation7 + $0x268] ss:$16 sps:$4 sm:$0xff]  }
  0xbd   :  { %1409 = vmatprep.subr.bf16.mxu0 %v2405_v48  ;;  %v2450_v48 = vld [vmem:[#allocation7 + $0x28c] ss:$16 sps:$4 sm:$0xff]  }
  0xbe   :  { %1494 = vmatpush1.bf16.msra.mxu1 %v2400_v59  ;;  %v2453_v59 = vld [vmem:[#allocation7 + $0x2a4] ss:$16 sps:$4 sm:$0xff]  }
  0xbf   :  { %1495 = vmatprep.subr.bf16.mxu1 %v2408_v60  ;;  %v2456_v60 = vld [vmem:[#allocation7 + $0x2ac] ss:$16 sps:$4 sm:$0xff]  }
  0xc0   :  { %1410 = vmatpush1.bf16.msra.mxu0 %v2403_v50 }
  0xc1   :  { %1411 = vmatprep.subr.bf16.mxu0 %v2411_v62 }
  0xc2   :  { %1496 = vmatpush1.bf16.msra.mxu1 %v2406_v61 }
  0xc3   :  { %1497 = vmatprep.subr.bf16.mxu1 %v2414_v63 }
  0xc4   :  { %1412 = vmatpush1.bf16.msra.mxu0 %v2409_v0 }
  0xc5   :  { %1413 = vmatprep.subr.bf16.mxu0 %v2417_v2  ;;  %v2454_v2 = vld [vmem:[#allocation7 + $0x2a8] ss:$16 sps:$4 sm:$0xff]  }
  0xc6   :  { %1498 = vmatpush1.bf16.msra.mxu1 %v2412_v1  ;;  %v2451_v1 = vld [vmem:[#allocation7 + $0x2a0] ss:$16 sps:$4 sm:$0xff]  }
  0xc7   :  { %1499 = vmatprep.subr.bf16.mxu1 %v2420_v3 }
  0xc8   :  { %1414 = vmatpush1.bf16.msra.mxu0 %v2415_v4  ;;  %v2459_v4 = vld [vmem:[#allocation7 + $0x2c4] ss:$16 sps:$4 sm:$0xff]  }
  0xc9   :  { %1426 = vmatprep.subr.bf16.mxu0 %v2423_v6 }
  0xca   :  { %1500 = vmatpush1.bf16.msra.mxu1 %v2418_v5  ;;  %v2462_v5 = vld [vmem:[#allocation7 + $0x2cc] ss:$16 sps:$4 sm:$0xff]  }
  0xcb   :  { %1512 = vmatprep.subr.bf16.mxu1 %v2426_v7  ;;  %v2457_v7 = vld [vmem:[#allocation7 + $0x2c0] ss:$16 sps:$4 sm:$0xff]  }
 0x15e   :  { %v529_v15 = vpop.f32.mrb[0].mxu0 }
 0x15f   :  { %v530_v16 = vadd.f32 %v529_v15, %v158_v13  ;;  %v531_v17 = vpop.f32.mrb[1].mxu0  ;;  %v2466_v15 = vld [vmem:[#allocation7 + $0x2e8] ss:$16 sps:$4 sm:$0xff]  }
 0x160   :  { %v532_v18 = vadd.f32 %v531_v17, %v162_v14  ;;  %v533_v19 = vpop.f32.mrb[2].mxu0  ;;  %v572_v49 = vpop.f32.mrb[0].mxu1  ;;  %v2474_v17 = vld [vmem:[#allocation7 + $0x30c] ss:$16 sps:$4 sm:$0xff]  }
 0x161   :  { %v534_v20 = vadd.f32 %v533_v19, %v158_v13  ;;  %v535_v21 = vpop.f32.mrb[3].mxu0  ;;  %v581_v23 = vmax.f32 %v530_v16, 0.0  ;;  %v573_v50 = vadd.f32 %v572_v49, %v166_v43  ;;  %v574_v51 = vpop.f32.mrb[1].mxu1  ;;  %v2468_v13 = vld [vmem:[#allocation7 + $0x2ec] ss:$16 sps:$4 sm:$0xff]  }
 0x162   :  { %v536_v22 = vadd.f32 %v535_v21, %v162_v14  ;;  %v582_v25 = vmax.f32 %v532_v18, 0.0  ;;  %v575_v52 = vadd.f32 %v574_v51, %v170_v44  ;;  %v576_v53 = vpop.f32.mrb[2].mxu1  ;;  %v2463_v14 = vld [vmem:[#allocation7 + $0x2e0] ss:$16 sps:$4 sm:$0xff]   ;;  %v2471_v16 = vld [vmem:[#allocation7 + $0x304] ss:$16 sps:$4 sm:$0xff]  }
 0x163   :  { %v585_v24 = vmax.f32 %v534_v20, 0.0  ;;  %v583_v56 = vmax.f32 %v573_v50, 0.0  ;;  %v577_v57 = vadd.f32 %v576_v53, %v166_v43  ;;  %v578_v58 = vpop.f32.mrb[3].mxu1  ;;  %v2469_v18 = vld [vmem:[#allocation7 + $0x300] ss:$16 sps:$4 sm:$0xff]  }
 0x164   :  { %v586_v26 = vmax.f32 %v536_v22, 0.0  ;;  %v584_v61 = vmax.f32 %v575_v52, 0.0  ;;  %v579_v62 = vadd.f32 %v578_v58, %v170_v44  ;;  %v2472_v19 = vld [vmem:[#allocation7 + $0x308] ss:$16 sps:$4 sm:$0xff]   ;;  %v2477_v20 = vld [vmem:[#allocation7 + $0x324] ss:$16 sps:$4 sm:$0xff]  }
 0x165   :  { %v589_v27 = vpack.c.bf16 %v585_v24, %v581_v23  ;;  %v587_v63 = vmax.f32 %v577_v57, 0.0  ;;  %v2480_v21 = vld [vmem:[#allocation7 + $0x32c] ss:$16 sps:$4 sm:$0xff]   ;;  %v2475_v22 = vld [vmem:[#allocation7 + $0x320] ss:$16 sps:$4 sm:$0xff]  }
 0x166   :  { %v590_v28 = vpack.c.bf16 %v586_v26, %v582_v25  ;;  %v588_v0 = vmax.f32 %v579_v62, 0.0  ;;  %v2478_v23 = vld [vmem:[#allocation7 + $0x328] ss:$16 sps:$4 sm:$0xff]   ;;  %v2483_v24 = vld [vmem:[#allocation7 + $0x344] ss:$16 sps:$4 sm:$0xff]  }
 0x167   :  { %v2806_v3 = vpack.c.bf16 %v587_v63, %v583_v56  ;;  %v2486_v25 = vld [vmem:[#allocation7 + $0x34c] ss:$16 sps:$4 sm:$0xff]   ;;  %v2481_v26 = vld [vmem:[#allocation7 + $0x340] ss:$16 sps:$4 sm:$0xff]   ;;  %v2514_v49 = vld [vmem:[#allocation7 + $0x3e8] ss:$16 sps:$4 sm:$0xff]  }
 0x168   :  { %1415 = vmatprep.mubr.bf16.mxu0 %v590_v28  ;;  %1501 = vmatprep.mubr.bf16.mxu1 %v590_v28  ;;  %v592_v6 = vpack.c.bf16 %v588_v0, %v584_v61  ;;  %v2489_v28 = vld [vmem:[#allocation7 + $0x364] ss:$16 sps:$4 sm:$0xff]   ;;  %v2510_v43 = vld [vmem:[#allocation7 + $0x3cc] ss:$16 sps:$4 sm:$0xff]   ;;  %v2505_v44 = vld [vmem:[#allocation7 + $0x3c0] ss:$16 sps:$4 sm:$0xff]  }
 0x169   :  { %1416 = vmatmul.mubr.bf16.vlgmr.msra.gmra.mrb[4].mxu0 %v589_v27  ;;  %1502 = vmatmul.mubr.bf16.vlgmr.msra.gmra.mrb[4].mxu1 %v589_v27  ;;  %v2484_v27 = vld [vmem:[#allocation7 + $0x348] ss:$16 sps:$4 sm:$0xff]   ;;  %v2517_v50 = vld [vmem:[#allocation8 + $0x40] sm:$0xff]   ;;  %v2525_v58 = vld [vmem:[#allocation8 + $0x50] sm:$0xff]  }
 0x16a   :  { %1427 = vmatpush1.bf16.msra.mxu0 %v2421_v29  ;;  %1513 = vmatpush1.bf16.msra.mxu1 %v2424_v30  ;;  %v2492_v29 = vld [vmem:[#allocation7 + $0x36c] ss:$16 sps:$4 sm:$0xff]   ;;  %v2487_v30 = vld [vmem:[#allocation7 + $0x360] ss:$16 sps:$4 sm:$0xff]  }
 0x16b   :  { %1428 = vmatprep.subr.bf16.mxu0 %v2429_v31  ;;  %1514 = vmatprep.subr.bf16.mxu1 %v2432_v32  ;;  %v2490_v31 = vld [vmem:[#allocation7 + $0x368] ss:$16 sps:$4 sm:$0xff]   ;;  %v2495_v32 = vld [vmem:[#allocation7 + $0x384] ss:$16 sps:$4 sm:$0xff]  }
 0x16c   :  { %1458 = vmatprep.mubr.bf16.mxu0 %v592_v6  ;;  %1544 = vmatprep.mubr.bf16.mxu1 %v592_v6  ;;  %v2518_v51 = vld [vmem:[#allocation8 + $0xc0] sm:$0xff]   ;;  %v2523_v56 = vld [vmem:[#allocation8 + $0x8] sm:$0xff]   ;;  %v2528_v61 = vld [vmem:[#allocation8 + $0x90] sm:$0xff]  }
 0x16d   :  { %v2519_v52 = vld [vmem:[#allocation8] sm:$0xff]   ;;  %v2524_v57 = vld [vmem:[#allocation8 + $0x88] sm:$0xff]   ;;  %v2529_v62 = vld [vmem:[#allocation8 + $0x58] sm:$0xff]  }
 0x16e   :  { %1429 = vmatpush1.bf16.msra.mxu0 %v2427_v33  ;;  %1515 = vmatpush1.bf16.msra.mxu1 %v2430_v34  ;;  %v2498_v33 = vld [vmem:[#allocation7 + $0x38c] ss:$16 sps:$4 sm:$0xff]   ;;  %v2493_v34 = vld [vmem:[#allocation7 + $0x380] ss:$16 sps:$4 sm:$0xff]  }
 0x16f   :  { %1430 = vmatprep.subr.bf16.mxu0 %v2435_v35  ;;  %1516 = vmatprep.subr.bf16.mxu1 %v2438_v36  ;;  %v2496_v35 = vld [vmem:[#allocation7 + $0x388] ss:$16 sps:$4 sm:$0xff]   ;;  %v2501_v36 = vld [vmem:[#allocation7 + $0x3a4] ss:$16 sps:$4 sm:$0xff]  }
 0x170   :  { %v2520_v53 = vld [vmem:[#allocation8 + $0x80] sm:$0xff]   ;;  %v2530_v63 = vld [vmem:[#allocation8 + $0xd8] sm:$0xff]   ;;  %v2537_v6 = vld [vmem:[#allocation8 + $0x68] sm:$0xff]  }
 0x171   :  { %v2531_v0 = vld [vmem:[#allocation8 + $0x18] sm:$0xff]  }
 0x172   :  { %1431 = vmatpush1.bf16.msra.mxu0 %v2433_v39  ;;  %1517 = vmatpush1.bf16.msra.mxu1 %v2436_v40  ;;  %v2504_v39 = vld [vmem:[#allocation7 + $0x3ac] ss:$16 sps:$4 sm:$0xff]   ;;  %v2499_v40 = vld [vmem:[#allocation7 + $0x3a0] ss:$16 sps:$4 sm:$0xff]  }
 0x173   :  { %1432 = vmatprep.subr.bf16.mxu0 %v2441_v41  ;;  %1518 = vmatprep.subr.bf16.mxu1 %v2444_v42  ;;  %v2502_v41 = vld [vmem:[#allocation7 + $0x3a8] ss:$16 sps:$4 sm:$0xff]   ;;  %v2507_v42 = vld [vmem:[#allocation7 + $0x3c4] ss:$16 sps:$4 sm:$0xff]  }
 0x176   :  { %1433 = vmatpush1.bf16.msra.mxu0 %v2439_v45  ;;  %1519 = vmatpush1.bf16.msra.mxu1 %v2442_v46  ;;  %v2508_v45 = vld [vmem:[#allocation7 + $0x3c8] ss:$16 sps:$4 sm:$0xff]   ;;  %v2513_v46 = vld [vmem:[#allocation7 + $0x3e4] ss:$16 sps:$4 sm:$0xff]  }
 0x177   :  { %1434 = vmatprep.subr.bf16.mxu0 %v2447_v47  ;;  %1520 = vmatprep.subr.bf16.mxu1 %v2450_v48  ;;  %v2516_v47 = vld [vmem:[#allocation7 + $0x3ec] ss:$16 sps:$4 sm:$0xff]   ;;  %v2511_v48 = vld [vmem:[#allocation7 + $0x3e0] ss:$16 sps:$4 sm:$0xff]  }
 0x17a   :  { %1435 = vmatpush1.bf16.msra.mxu0 %v2445_v54  ;;  %1521 = vmatpush1.bf16.msra.mxu1 %v2448_v55  ;;  %v2521_v54 = vld [vmem:[#allocation8 + $0x48] sm:$0xff]  }
 0x17b   :  { %1436 = vmatprep.subr.bf16.mxu0 %v2453_v59  ;;  %1522 = vmatprep.subr.bf16.mxu1 %v2456_v60  ;;  %v2522_v55 = vld [vmem:[#allocation8 + $0xc8] sm:$0xff]   ;;  %v2526_v59 = vld [vmem:[#allocation8 + $0xd0] sm:$0xff]  }
 0x17c   :  { %v2527_v60 = vld [vmem:[#allocation8 + $0x10] sm:$0xff]  }
 0x17e   :  { %1437 = vmatpush1.bf16.msra.mxu0 %v2451_v1  ;;  %1523 = vmatpush1.bf16.msra.mxu1 %v2454_v2  ;;  %v2532_v1 = vld [vmem:[#allocation8 + $0x98] sm:$0xff]   ;;  %v2533_v2 = vld [vmem:[#allocation8 + $0x60] sm:$0xff]  }
 0x17f   :  { %1438 = vmatprep.subr.bf16.mxu0 %v2459_v4  ;;  %1524 = vmatprep.subr.bf16.mxu1 %v2462_v5  ;;  %v2535_v4 = vld [vmem:[#allocation8 + $0x20] sm:$0xff]  }
 0x180   :  { %v2536_v5 = vld [vmem:[#allocation8 + $0xa0] sm:$0xff]  }
 0x182   :  { %1439 = vmatpush1.bf16.msra.mxu0 %v2457_v7  ;;  %1525 = vmatpush1.bf16.msra.mxu1 %v2460_v8  ;;  %v2538_v7 = vld [vmem:[#allocation8 + $0xe8] sm:$0xff]  }
 0x183   :  { %1440 = vmatprep.subr.bf16.mxu0 %v2465_v11  ;;  %1526 = vmatprep.subr.bf16.mxu1 %v2468_v13  ;;  %v2539_v8 = vld [vmem:[#allocation8 + $0x28] sm:$0xff]   ;;  %v2541_v13 = vld [vmem:[#allocation8 + $0x70] sm:$0xff]  }
 0x184   :  { %v2540_v11 = vld [vmem:[#allocation8 + $0xa8] sm:$0xff]  }
 0x186   :  { %1441 = vmatpush1.bf16.msra.mxu0 %v2463_v14  ;;  %1527 = vmatpush1.bf16.msra.mxu1 %v2466_v15  ;;  %v2542_v14 = vld [vmem:[#allocation8 + $0xf0] sm:$0xff]  }
 0x187   :  { %1442 = vmatprep.subr.bf16.mxu0 %v2471_v16  ;;  %1528 = vmatprep.subr.bf16.mxu1 %v2474_v17  ;;  %v2543_v15 = vld [vmem:[#allocation8 + $0x30] sm:$0xff]   ;;  %v2545_v17 = vld [vmem:[#allocation8 + $0x78] sm:$0xff]  }
 0x188   :  { %v2544_v16 = vld [vmem:[#allocation8 + $0xb0] sm:$0xff]  }
 0x18a   :  { %1443 = vmatpush1.bf16.msra.mxu0 %v2469_v18  ;;  %1529 = vmatpush1.bf16.msra.mxu1 %v2472_v19  ;;  %v2546_v18 = vld [vmem:[#allocation8 + $0xf8] sm:$0xff]  }
 0x18b   :  { %1444 = vmatprep.subr.bf16.mxu0 %v2477_v20  ;;  %1530 = vmatprep.subr.bf16.mxu1 %v2480_v21  ;;  %v2547_v19 = vld [vmem:[#allocation8 + $0x38] sm:$0xff]   ;;  %v721_v21 = vld [vmem:[%s2840_s4] sm:$0xf] }
 0x18c   :  { %v2548_v20 = vld [vmem:[#allocation8 + $0xb8] sm:$0xff]  }
 0x18e   :  { %1445 = vmatpush1.bf16.msra.mxu0 %v2475_v22  ;;  %1531 = vmatpush1.bf16.msra.mxu1 %v2478_v23  ;;  %v726_v22 = vrot.slane %v721_v21, %v157_v10  ;;  %v734_v23 = vrot.slane %v721_v21, %v165_v37 }
 0x18f   :  { %1446 = vmatprep.subr.bf16.mxu0 %v2483_v24  ;;  %1532 = vmatprep.subr.bf16.mxu1 %v2486_v25  ;;  %v730_v24 = vrot.slane %v721_v21, %v161_v12  ;;  %v738_v25 = vrot.slane %v721_v21, %v169_v38 }
 0x192   :  { %1447 = vmatpush1.bf16.msra.mxu0 %v2481_v26  ;;  %1533 = vmatpush1.bf16.msra.mxu1 %v2484_v27 }
 0x193   :  { %1448 = vmatprep.subr.bf16.mxu0 %v2489_v28  ;;  %1534 = vmatprep.subr.bf16.mxu1 %v2492_v29 }
 0x196   :  { %1449 = vmatpush1.bf16.msra.mxu0 %v2487_v30  ;;  %1535 = vmatpush1.bf16.msra.mxu1 %v2490_v31 }
 0x197   :  { %1450 = vmatprep.subr.bf16.mxu0 %v2495_v32  ;;  %1536 = vmatprep.subr.bf16.mxu1 %v2498_v33 }
 0x19a   :  { %1451 = vmatpush1.bf16.msra.mxu0 %v2493_v34  ;;  %1537 = vmatpush1.bf16.msra.mxu1 %v2496_v35 }
 0x19b   :  { %1452 = vmatprep.subr.bf16.mxu0 %v2501_v36  ;;  %1538 = vmatprep.subr.bf16.mxu1 %v2504_v39 }
 0x19e   :  { %1453 = vmatpush1.bf16.msra.mxu0 %v2499_v40  ;;  %1539 = vmatpush1.bf16.msra.mxu1 %v2502_v41 }
 0x19f   :  { %1454 = vmatprep.subr.bf16.mxu0 %v2507_v42  ;;  %1540 = vmatprep.subr.bf16.mxu1 %v2510_v43 }
 0x1a2   :  { %1455 = vmatpush1.bf16.msra.mxu0 %v2505_v44  ;;  %1541 = vmatpush1.bf16.msra.mxu1 %v2508_v45 }
 0x1a3   :  { %1456 = vmatprep.subr.bf16.mxu0 %v2513_v46  ;;  %1542 = vmatprep.subr.bf16.mxu1 %v2516_v47 }
 0x1a6   :  { %1457 = vmatpush1.bf16.msra.mxu0 %v2511_v48  ;;  %1543 = vmatpush1.bf16.msra.mxu1 %v2514_v49 }
 0x1a7   :  { %2158 = vmatprep.subr.bf16.mxu0 %v2517_v50  ;;  %2180 = vmatprep.subr.bf16.mxu1 %v2518_v51 }
 0x1a9   :  { %1459 = vmatmul.mubr.bf16.vlgmr.msra.gmra.mrb[4].mxu0 %v2806_v3  ;;  %1545 = vmatmul.mubr.bf16.vlgmr.msra.gmra.mrb[4].mxu1 %v2806_v3  ;;  %v2534_v3 = vld [vmem:[#allocation8 + $0xe0] sm:$0xff]  }
 0x1aa   :  { %2159 = vmatpush3.bf16.msra.mxu0 %v2519_v52  ;;  %2181 = vmatpush3.bf16.msra.mxu1 %v2520_v53  ;;  %v2125_v53 = vld [vmem:[%s2842_s6] ss:$0 sm:$0xff]  ;;  %s2637_s6 = scalar_lea.vmem %s1920_s8, 256 }
 0x1ab   :  { %2160 = vmatprep.subr.bf16.mxu0 %v2521_v54  ;;  %2182 = vmatprep.subr.bf16.mxu1 %v2522_v55  ;;  %p2638_p4 = scmp.ne.s32.totalorder %s1920_s8, %s2637_s6  ;;  %p2643_p6 = scmp.lt.s32.totalorder %s2637_s6, %s2637_s6 }
 0x1ad   :  { %p2644_p7 = por %p2643_p6, %p2642_p5 }
 0x1ae   :  { %2161 = vmatpush3.bf16.msra.mxu0 %v2523_v56  ;;  %2183 = vmatpush3.bf16.msra.mxu1 %v2524_v57 }
 0x1af   :  { %2162 = vmatprep.subr.bf16.mxu0 %v2525_v58  ;;  %2184 = vmatprep.subr.bf16.mxu1 %v2526_v59  ;;  %p2645_p8 = pnand %p2644_p7, %p2638_p4 }
 0x1b2   :  { %2163 = vmatpush3.bf16.msra.mxu0 %v2527_v60  ;;  %2185 = vmatpush3.bf16.msra.mxu1 %v2528_v61 }
 0x1b3   :  { %2164 = vmatprep.subr.bf16.mxu0 %v2529_v62  ;;  %2186 = vmatprep.subr.bf16.mxu1 %v2530_v63 }
 0x1b6   :  { %2165 = vmatpush3.bf16.msra.mxu0 %v2531_v0  ;;  %2187 = vmatpush3.bf16.msra.mxu1 %v2532_v1 }
 0x1b7   :  { %2166 = vmatprep.subr.bf16.mxu0 %v2533_v2  ;;  %2188 = vmatprep.subr.bf16.mxu1 %v2534_v3 }
 0x1ba   :  { %2167 = vmatpush3.bf16.msra.mxu0 %v2535_v4  ;;  %2189 = vmatpush3.bf16.msra.mxu1 %v2536_v5 }
 0x1bb   :  { %2168 = vmatprep.subr.bf16.mxu0 %v2537_v6  ;;  %2190 = vmatprep.subr.bf16.mxu1 %v2538_v7 }
 0x1be   :  { %2169 = vmatpush3.bf16.msra.mxu0 %v2539_v8  ;;  %2191 = vmatpush3.bf16.msra.mxu1 %v2540_v11 }
 0x1bf   :  { %2170 = vmatprep.subr.bf16.mxu0 %v2541_v13  ;;  %2192 = vmatprep.subr.bf16.mxu1 %v2542_v14 }
 0x1c2   :  { %2171 = vmatpush3.bf16.msra.mxu0 %v2543_v15  ;;  %2193 = vmatpush3.bf16.msra.mxu1 %v2544_v16 }
 0x1c3   :  { %2172 = vmatprep.subr.bf16.mxu0 %v2545_v17  ;;  %2194 = vmatprep.subr.bf16.mxu1 %v2546_v18 }
 0x1c6   :  { %2173 = vmatpush3.bf16.msra.mxu0 %v2547_v19  ;;  %2195 = vmatpush3.bf16.msra.mxu1 %v2548_v20 }
 0x27c   :  { %v1460_v26 = vpop.f32.mrb[4].mxu0  ;;  %v1546_v27 = vpop.f32.mrb[4].mxu1 }
 0x27d   :  { %v2202_v28 = vadd.f32 %v1460_v26, %v726_v22  ;;  %v2206_v29 = vadd.f32 %v1546_v27, %v734_v23  ;;  %v1462_v30 = vpop.f32.mrb[5].mxu0  ;;  %v1548_v31 = vpop.f32.mrb[5].mxu1 }
 0x27e   :  { %v2203_v32 = vadd.f32 %v1462_v30, %v730_v24  ;;  %v2207_v33 = vadd.f32 %v1548_v31, %v738_v25  ;;  %v1464_v34 = vpop.f32.mrb[6].mxu0  ;;  %v1550_v35 = vpop.f32.mrb[6].mxu1 }
 0x27f   :  { %v2204_v10 = vadd.f32 %v1464_v34, %v726_v22  ;;  %v2208_v36 = vadd.f32 %v1550_v35, %v734_v23  ;;  %v1466_v39 = vpop.f32.mrb[7].mxu0  ;;  %v1552_v37 = vpop.f32.mrb[7].mxu1  ;;  %v1555_v12 = vmax.f32 %v2202_v28, 0.0  ;;  %v1557_v42 = vmax.f32 %v2206_v29, 0.0 }
 0x280   :  { %v2205_v40 = vadd.f32 %v1466_v39, %v730_v24  ;;  %v2209_v41 = vadd.f32 %v1552_v37, %v738_v25  ;;  %v1556_v43 = vmax.f32 %v2203_v32, 0.0  ;;  %v1558_v44 = vmax.f32 %v2207_v33, 0.0 }
 0x281   :  { %v1559_v9 = vmax.f32 %v2204_v10, 0.0  ;;  %v1561_v38 = vmax.f32 %v2208_v36, 0.0 }
 0x282   :  { %v1560_v45 = vmax.f32 %v2205_v40, 0.0  ;;  %v1562_v46 = vmax.f32 %v2209_v41, 0.0 }
 0x283   :  { %v1563_v47 = vpack.c.bf16 %v1559_v9, %v1555_v12  ;;  %v1565_v48 = vpack.c.bf16 %v1561_v38, %v1557_v42 }
 0x284   :  { %v1564_v49 = vpack.c.bf16 %v1560_v45, %v1556_v43  ;;  %v1566_v50 = vpack.c.bf16 %v1562_v46, %v1558_v44 }
 0x286   :  { %1862 = vmatprep.mubr.bf16.mxu0 %v1564_v49  ;;  %1903 = vmatprep.mubr.bf16.mxu1 %v1566_v50 }
 0x287   :  { %1863 = vmatmul.mubr.bf16.vlgmr.msra.gmra.mrb[8].mxu0 %v1563_v47  ;;  %1904 = vmatmul.mubr.bf16.vlgmr.msra.gmra.mrb[8].mxu1 %v1565_v48 }
 0x35a   :  { %v2174_v51 = vpop.f32.mrb[8].mxu0  ;;  %v2196_v52 = vpop.f32.mrb[8].mxu1 }
 0x35b   :  { %v2175_v54 = vpop.f32.mrb[9].mxu0  ;;  %v2197_v55 = vpop.f32.mrb[9].mxu1 }
 0x35c   :  { %v2176_v56 = vadd.f32 %v2175_v54, %v2174_v51  ;;  %v2198_v57 = vadd.f32 %v2197_v55, %v2196_v52  ;;  %v2177_v58 = vpop.f32.mrb[10].mxu0  ;;  %v2199_v59 = vpop.f32.mrb[10].mxu1 }
 0x35d   :  { %v2178_v60 = vpop.f32.mrb[11].mxu0  ;;  %v2200_v61 = vpop.f32.mrb[11].mxu1 }
 0x35e   :  { %v1865_v62 = vadd.f32 %v2176_v56, %v2125_v53  ;;  %v2179_v63 = vadd.f32 %v2178_v60, %v2177_v58  ;;  %v2201_v0 = vadd.f32 %v2200_v61, %v2199_v59 }
 0x360   :  { %v1906_v1 = vadd.f32 %v2198_v57, %v1865_v62  ;;  %v1868_v2 = vadd.f32 %v2179_v63, %v2125_v53 }
 0x362   :  { %1912 = vst [vmem:[#allocation10] sm:$0xff] %v1906_v1  ;;  %v1909_v3 = vadd.f32 %v2201_v0, %v1868_v2 }
 0x364   :  { %1913 = vst [vmem:[#allocation10 + $0x8] sm:$0xff] %v1909_v3 }
 0x365   :  { %2648 = shalt.err (!%p2645_p8)
}
 0x366   :  { %s2649_s11 = scalar_lea.hbm %s2843_s7, 256 }
 0x367   :  { %p2650_p9 = scmp.ne.s32.totalorder %s2843_s7, %s2649_s11  ;;  %p2653_p10 = scmp.lt.u32.totalorder %s2649_s11, %s2843_s7 }
 0x369   :  { %p2655_p11 = pnand %p2653_p10, %p2650_p9 }
 0x36b   :  { %2658 = shalt.err (!%p2655_p11)
}
 0x36c   :  { %s2676_s27 = smov 128   ;;  %s2677_s17 = smov 8  }
 0x36d   :  { %1925 = dma.vmem_to_hbm [thread:$0]  %s1920_s8, 256, %s2843_s7, [#allocation4], %s2676_s27, %s2676_s27, %s2677_s17  }
 0x36e   :  { %2665 = dma.done.wait [#allocation4], 256  }
 0x36f   :  { %2666 = vsyncadd [#allocation4], 4294967040 }
 0x370   :  { %1929 = vsyncpa [#allocation3], 1 }
 0x371   :  { %1930 = vsyncpa [#allocation6], 1 }
 0x372   :  { %1931 = vsyncpa [#allocation9], 1 }
 0x373   :  { %1932 = vsyncpa [#allocation4], 1 }

</bundles_post_ra>
